<compile_context>
chip_gen: v7x
topology: tpu7x:2x2x1
jax: 0.10.0
libtpu: 0.0.40
codegen_flags: <defaults>
</compile_context>

<pallas_src>
import jax
import jax.numpy as jnp
from jax.experimental import pallas as pl
from jax.experimental.pallas import tpu as pltpu

# Small shapes consistent with the module's __init__
VOCAB = 50    # input_dim (vocab size)
EMB   = 32    # embedding_dim
HID   = 32    # hidden_dim
OUT   = 4     # output_dim
BATCH = 2
SEQ   = 8
# num_layers=1, bidirectional=True  -> directions=2, hidden_size = 2*HID


def rnn_kernel(x_ref, wih_f_ref, whh_f_ref, b_f_ref,
               wih_b_ref, b_b_ref, wlin_f_ref, wlin_b_ref, blin_ref,
               out_ref):
    # Layout: x_ref is time-major, time-flattened [T*B, E] (fp32); all weight
    # matrices are pre-transposed to [in_features, out_features] so every
    # matmul is x @ W on the MXU; biases are [1, H] / [1, O] for row broadcast.
    x_all = x_ref[...]                                            # [T*B, E]

    # Hoisted forward-direction input projection for all time steps, bias
    # folded in once (one MXU matmul instead of one per recurrence step).
    xw = (jnp.dot(x_all, wih_f_ref[...], preferred_element_type=jnp.float32)
          + b_f_ref[...])                                         # [T*B, H]

    # Backward-direction value at t = T-1: a single tanh step from a zero
    # hidden state (reverse W_hh multiplies zero -> omitted).  Independent of
    # the forward chain, so issued before the serial recurrence starts.
    x_last = x_all[(SEQ - 1) * BATCH:(SEQ) * BATCH, :]            # [B, E]
    h_bwd = jnp.tanh(
        jnp.dot(x_last, wih_b_ref[...], preferred_element_type=jnp.float32)
        + b_b_ref[...])                                           # [B, H]

    # Forward recurrence, hidden state carried in vregs.  T is static, so the
    # loop is fully unrolled; per-step work is one [B,H]@[H,H] matmul, one add
    # and one tanh on the serial critical path.
    whh = whh_f_ref[...]                                          # [H, H]
    h = jnp.zeros((BATCH, HID), jnp.float32)
    for t in range(SEQ):
        h = jnp.tanh(
            xw[t * BATCH:(t + 1) * BATCH, :]
            + jnp.dot(h, whh, preferred_element_type=jnp.float32))

    # Final linear as two split dots (avoids a lane-axis concatenate), then
    # numerically-stable softmax over classes (dim=1).
    logits = (jnp.dot(h, wlin_f_ref[...], preferred_element_type=jnp.float32)
              + jnp.dot(h_bwd, wlin_b_ref[...],
                        preferred_element_type=jnp.float32)
              + blin_ref[...])                                    # [B, O]
    m = jnp.max(logits, axis=-1, keepdims=True)
    e = jnp.exp(logits - m)
    out_ref[...] = e / jnp.sum(e, axis=-1, keepdims=True)


def rnn_model_forward(x_tokens, params):
    # Glue done in JAX: embedding gather + time-major flatten to [T*B, E]
    # (reshape in the wrapper so the kernel never relayouts in VMEM).
    emb = params["embedding"][x_tokens]                           # [B, T, E]
    x = jnp.transpose(emb, (1, 0, 2)).astype(jnp.float32)         # [T, B, E]
    x_flat = x.reshape(SEQ * BATCH, EMB)                          # [T*B, E]

    wih_f = params["w_ih_f"].T                                    # [E, H]
    whh_f = params["w_hh_f"].T                                    # [H, H]
    b_f   = (params["b_ih_f"] + params["b_hh_f"]).reshape(1, HID)
    wih_b = params["w_ih_b"].T                                    # [E, H]
    b_b   = (params["b_ih_b"] + params["b_hh_b"]).reshape(1, HID)
    wlin_t = params["w_lin"].T                                    # [2H, O]
    wlin_f = wlin_t[:HID]                                         # [H, O]
    wlin_b = wlin_t[HID:]                                         # [H, O]
    blin  = params["b_lin"].reshape(1, OUT)

    vmem_spec = pl.BlockSpec(memory_space=pltpu.MemorySpace.VMEM)
    return pl.pallas_call(
        rnn_kernel,
        out_shape=jax.ShapeDtypeStruct((BATCH, OUT), jnp.float32),
        in_specs=[vmem_spec] * 9,
        out_specs=vmem_spec,
    )(x_flat, wih_f, whh_f, b_f, wih_b, b_b, wlin_f, wlin_b, blin)


def reference_forward(x_tokens, params):
    # pure-JAX reference matching torch.nn.RNN(bidirectional=True) semantics
    emb = params["embedding"][x_tokens].astype(jnp.float32)       # [B, T, E]
    B, T, _ = emb.shape
    h = jnp.zeros((B, HID), jnp.float32)
    for t in range(T):
        h = jnp.tanh(emb[:, t] @ params["w_ih_f"].T + params["b_ih_f"]
                     + h @ params["w_hh_f"].T + params["b_hh_f"])
    hb = jnp.tanh(emb[:, -1] @ params["w_ih_b"].T
                  + params["b_ih_b"] + params["b_hh_b"])
    feat = jnp.concatenate([h, hb], axis=-1)
    logits = feat @ params["w_lin"].T + params["b_lin"]
    return jax.nn.softmax(logits, axis=1)


def init_params(key):
    ks = jax.random.split(key, 10)
    u = lambda k, shape, s: jax.random.uniform(k, shape, jnp.float32, -s, s)
    return {
        "embedding": u(ks[0], (VOCAB, EMB), 1.0),
        "w_ih_f": u(ks[1], (HID, EMB), 0.2),
        "w_hh_f": u(ks[2], (HID, HID), 0.2),
        "b_ih_f": u(ks[3], (HID,), 0.2),
        "b_hh_f": u(ks[4], (HID,), 0.2),
        "w_ih_b": u(ks[5], (HID, EMB), 0.2),
        # reverse-direction W_hh exists in the module but does not affect the
        # returned probs (only the t=T-1 backward state is consumed).
        "b_ih_b": u(ks[6], (HID,), 0.2),
        "b_hh_b": u(ks[7], (HID,), 0.2),
        "w_lin": u(ks[8], (OUT, 2 * HID), 0.2),
        "b_lin": u(ks[9], (OUT,), 0.2),
    }


if __name__ == "__main__":
    key = jax.random.PRNGKey(0)
    k_tok, k_par = jax.random.split(key)
    params = init_params(k_par)
    x_tokens = jax.random.randint(k_tok, (BATCH, SEQ), 0, VOCAB, dtype=jnp.int32)

    probs = rnn_model_forward(x_tokens, params)
    probs = jax.block_until_ready(probs)

    ref = reference_forward(x_tokens, params)
    assert probs.shape == (BATCH, OUT)
    assert jnp.allclose(probs, ref, rtol=1e-5, atol=1e-5)
    assert jnp.allclose(jnp.sum(probs, axis=1), 1.0, atol=1e-5)
    print("KERNEL_OK")
</pallas_src>

<mosaic_0001>
module attributes {stable_mosaic.version = 11 : i64} {
  func.func @rnn_kernel(%arg0: memref<16x32xf32, #tpu.memory_space<vmem>>, %arg1: memref<32x32xf32, #tpu.memory_space<vmem>>, %arg2: memref<32x32xf32, #tpu.memory_space<vmem>>, %arg3: memref<1x32xf32, #tpu.memory_space<vmem>>, %arg4: memref<32x32xf32, #tpu.memory_space<vmem>>, %arg5: memref<1x32xf32, #tpu.memory_space<vmem>>, %arg6: memref<32x4xf32, #tpu.memory_space<vmem>>, %arg7: memref<32x4xf32, #tpu.memory_space<vmem>>, %arg8: memref<1x4xf32, #tpu.memory_space<vmem>>, %arg9: memref<2x4xf32, #tpu.memory_space<vmem>>) attributes {dimension_semantics = [], scalar_prefetch = 0 : i64, scratch_operands = 0 : i64, tpu.core_type = #tpu.core_type<tc>} {
    %c0 = arith.constant 0 : index
    %c0_0 = arith.constant 0 : index
    %0 = vector.load %arg0[%c0, %c0_0] : memref<16x32xf32, #tpu.memory_space<vmem>>, vector<16x32xf32>
    %c0_1 = arith.constant 0 : index
    %c0_2 = arith.constant 0 : index
    %1 = vector.load %arg1[%c0_1, %c0_2] : memref<32x32xf32, #tpu.memory_space<vmem>>, vector<32x32xf32>
    %cst = arith.constant dense<0.000000e+00> : vector<16x32xf32>
    %2 = tpu.matmul %0, %1, %cst {dimension_numbers = #tpu.dot_dimension_numbers<[1], [0], [0], [1], [0, 0, 1, 1], [], []>} : vector<16x32xf32>, vector<32x32xf32>, vector<16x32xf32> -> vector<16x32xf32>
    %c0_3 = arith.constant 0 : index
    %c0_4 = arith.constant 0 : index
    %3 = vector.load %arg3[%c0_3, %c0_4] : memref<1x32xf32, #tpu.memory_space<vmem>>, vector<1x32xf32>
    %4 = vector.broadcast %3 : vector<1x32xf32> to vector<16x32xf32>
    %5 = arith.addf %2, %4 : vector<16x32xf32>
    %6 = vector.extract_strided_slice %0 {offsets = [14, 0], sizes = [2, 32], strides = [1, 1]} : vector<16x32xf32> to vector<2x32xf32>
    %c0_5 = arith.constant 0 : index
    %c0_6 = arith.constant 0 : index
    %7 = vector.load %arg4[%c0_5, %c0_6] : memref<32x32xf32, #tpu.memory_space<vmem>>, vector<32x32xf32>
    %cst_7 = arith.constant dense<0.000000e+00> : vector<2x32xf32>
    %8 = tpu.matmul %6, %7, %cst_7 {dimension_numbers = #tpu.dot_dimension_numbers<[1], [0], [0], [1], [0, 0, 1, 1], [], []>} : vector<2x32xf32>, vector<32x32xf32>, vector<2x32xf32> -> vector<2x32xf32>
    %c0_8 = arith.constant 0 : index
    %c0_9 = arith.constant 0 : index
    %9 = vector.load %arg5[%c0_8, %c0_9] : memref<1x32xf32, #tpu.memory_space<vmem>>, vector<1x32xf32>
    %10 = vector.broadcast %9 : vector<1x32xf32> to vector<2x32xf32>
    %11 = arith.addf %8, %10 : vector<2x32xf32>
    %12 = math.tanh %11 : vector<2x32xf32>
    %c0_10 = arith.constant 0 : index
    %c0_11 = arith.constant 0 : index
    %13 = vector.load %arg2[%c0_10, %c0_11] : memref<32x32xf32, #tpu.memory_space<vmem>>, vector<32x32xf32>
    %cst_12 = arith.constant 0.000000e+00 : f32
    %14 = vector.broadcast %cst_12 : f32 to vector<2x32xf32>
    %15 = vector.extract_strided_slice %5 {offsets = [0, 0], sizes = [2, 32], strides = [1, 1]} : vector<16x32xf32> to vector<2x32xf32>
    %cst_13 = arith.constant dense<0.000000e+00> : vector<2x32xf32>
    %16 = tpu.matmul %14, %13, %cst_13 {dimension_numbers = #tpu.dot_dimension_numbers<[1], [0], [0], [1], [0, 0, 1, 1], [], []>} : vector<2x32xf32>, vector<32x32xf32>, vector<2x32xf32> -> vector<2x32xf32>
    %17 = arith.addf %15, %16 : vector<2x32xf32>
    %18 = math.tanh %17 : vector<2x32xf32>
    %19 = vector.extract_strided_slice %5 {offsets = [2, 0], sizes = [2, 32], strides = [1, 1]} : vector<16x32xf32> to vector<2x32xf32>
    %cst_14 = arith.constant dense<0.000000e+00> : vector<2x32xf32>
    %20 = tpu.matmul %18, %13, %cst_14 {dimension_numbers = #tpu.dot_dimension_numbers<[1], [0], [0], [1], [0, 0, 1, 1], [], []>} : vector<2x32xf32>, vector<32x32xf32>, vector<2x32xf32> -> vector<2x32xf32>
    %21 = arith.addf %19, %20 : vector<2x32xf32>
    %22 = math.tanh %21 : vector<2x32xf32>
    %23 = vector.extract_strided_slice %5 {offsets = [4, 0], sizes = [2, 32], strides = [1, 1]} : vector<16x32xf32> to vector<2x32xf32>
    %cst_15 = arith.constant dense<0.000000e+00> : vector<2x32xf32>
    %24 = tpu.matmul %22, %13, %cst_15 {dimension_numbers = #tpu.dot_dimension_numbers<[1], [0], [0], [1], [0, 0, 1, 1], [], []>} : vector<2x32xf32>, vector<32x32xf32>, vector<2x32xf32> -> vector<2x32xf32>
    %25 = arith.addf %23, %24 : vector<2x32xf32>
    %26 = math.tanh %25 : vector<2x32xf32>
    %27 = vector.extract_strided_slice %5 {offsets = [6, 0], sizes = [2, 32], strides = [1, 1]} : vector<16x32xf32> to vector<2x32xf32>
    %cst_16 = arith.constant dense<0.000000e+00> : vector<2x32xf32>
    %28 = tpu.matmul %26, %13, %cst_16 {dimension_numbers = #tpu.dot_dimension_numbers<[1], [0], [0], [1], [0, 0, 1, 1], [], []>} : vector<2x32xf32>, vector<32x32xf32>, vector<2x32xf32> -> vector<2x32xf32>
    %29 = arith.addf %27, %28 : vector<2x32xf32>
    %30 = math.tanh %29 : vector<2x32xf32>
    %31 = vector.extract_strided_slice %5 {offsets = [8, 0], sizes = [2, 32], strides = [1, 1]} : vector<16x32xf32> to vector<2x32xf32>
    %cst_17 = arith.constant dense<0.000000e+00> : vector<2x32xf32>
    %32 = tpu.matmul %30, %13, %cst_17 {dimension_numbers = #tpu.dot_dimension_numbers<[1], [0], [0], [1], [0, 0, 1, 1], [], []>} : vector<2x32xf32>, vector<32x32xf32>, vector<2x32xf32> -> vector<2x32xf32>
    %33 = arith.addf %31, %32 : vector<2x32xf32>
    %34 = math.tanh %33 : vector<2x32xf32>
    %35 = vector.extract_strided_slice %5 {offsets = [10, 0], sizes = [2, 32], strides = [1, 1]} : vector<16x32xf32> to vector<2x32xf32>
    %cst_18 = arith.constant dense<0.000000e+00> : vector<2x32xf32>
    %36 = tpu.matmul %34, %13, %cst_18 {dimension_numbers = #tpu.dot_dimension_numbers<[1], [0], [0], [1], [0, 0, 1, 1], [], []>} : vector<2x32xf32>, vector<32x32xf32>, vector<2x32xf32> -> vector<2x32xf32>
    %37 = arith.addf %35, %36 : vector<2x32xf32>
    %38 = math.tanh %37 : vector<2x32xf32>
    %39 = vector.extract_strided_slice %5 {offsets = [12, 0], sizes = [2, 32], strides = [1, 1]} : vector<16x32xf32> to vector<2x32xf32>
    %cst_19 = arith.constant dense<0.000000e+00> : vector<2x32xf32>
    %40 = tpu.matmul %38, %13, %cst_19 {dimension_numbers = #tpu.dot_dimension_numbers<[1], [0], [0], [1], [0, 0, 1, 1], [], []>} : vector<2x32xf32>, vector<32x32xf32>, vector<2x32xf32> -> vector<2x32xf32>
    %41 = arith.addf %39, %40 : vector<2x32xf32>
    %42 = math.tanh %41 : vector<2x32xf32>
    %43 = vector.extract_strided_slice %5 {offsets = [14, 0], sizes = [2, 32], strides = [1, 1]} : vector<16x32xf32> to vector<2x32xf32>
    %cst_20 = arith.constant dense<0.000000e+00> : vector<2x32xf32>
    %44 = tpu.matmul %42, %13, %cst_20 {dimension_numbers = #tpu.dot_dimension_numbers<[1], [0], [0], [1], [0, 0, 1, 1], [], []>} : vector<2x32xf32>, vector<32x32xf32>, vector<2x32xf32> -> vector<2x32xf32>
    %45 = arith.addf %43, %44 : vector<2x32xf32>
    %46 = math.tanh %45 : vector<2x32xf32>
    %c0_21 = arith.constant 0 : index
    %c0_22 = arith.constant 0 : index
    %47 = vector.load %arg6[%c0_21, %c0_22] : memref<32x4xf32, #tpu.memory_space<vmem>>, vector<32x4xf32>
    %cst_23 = arith.constant dense<0.000000e+00> : vector<2x4xf32>
    %48 = tpu.matmul %46, %47, %cst_23 {dimension_numbers = #tpu.dot_dimension_numbers<[1], [0], [0], [1], [0, 0, 1, 1], [], []>} : vector<2x32xf32>, vector<32x4xf32>, vector<2x4xf32> -> vector<2x4xf32>
    %c0_24 = arith.constant 0 : index
    %c0_25 = arith.constant 0 : index
    %49 = vector.load %arg7[%c0_24, %c0_25] : memref<32x4xf32, #tpu.memory_space<vmem>>, vector<32x4xf32>
    %cst_26 = arith.constant dense<0.000000e+00> : vector<2x4xf32>
    %50 = tpu.matmul %12, %49, %cst_26 {dimension_numbers = #tpu.dot_dimension_numbers<[1], [0], [0], [1], [0, 0, 1, 1], [], []>} : vector<2x32xf32>, vector<32x4xf32>, vector<2x4xf32> -> vector<2x4xf32>
    %51 = arith.addf %48, %50 : vector<2x4xf32>
    %c0_27 = arith.constant 0 : index
    %c0_28 = arith.constant 0 : index
    %52 = vector.load %arg8[%c0_27, %c0_28] : memref<1x4xf32, #tpu.memory_space<vmem>>, vector<1x4xf32>
    %53 = vector.broadcast %52 : vector<1x4xf32> to vector<2x4xf32>
    %54 = arith.addf %51, %53 : vector<2x4xf32>
    %cst_29 = arith.constant dense<0xFF800000> : vector<2xf32>
    %55 = vector.multi_reduction <maximumf>, %54, %cst_29 [1] : vector<2x4xf32> to vector<2xf32>
    %56 = vector.shape_cast %55 : vector<2xf32> to vector<2x1xf32>
    %57 = vector.broadcast %56 : vector<2x1xf32> to vector<2x4xf32>
    %58 = arith.subf %54, %57 : vector<2x4xf32>
    %59 = math.exp %58 : vector<2x4xf32>
    %cst_30 = arith.constant dense<0.000000e+00> : vector<2xf32>
    %60 = vector.multi_reduction <add>, %59, %cst_30 [1] : vector<2x4xf32> to vector<2xf32>
    %61 = vector.shape_cast %60 : vector<2xf32> to vector<2x1xf32>
    %62 = vector.broadcast %61 : vector<2x1xf32> to vector<2x4xf32>
    %63 = arith.divf %59, %62 : vector<2x4xf32>
    %c0_31 = arith.constant 0 : index
    %c0_32 = arith.constant 0 : index
    %64 = vector.load %arg9[%c0_31, %c0_32] : memref<2x4xf32, #tpu.memory_space<vmem>>, vector<2x4xf32>
    tpu.vector_store %arg9[%c0_31, %c0_32], %63 {strides = array<i32>} : memref<2x4xf32, #tpu.memory_space<vmem>>, vector<2x4xf32>,
    return
  }
}

</mosaic_0001>

<bundles_post_ra>
// kernel: tpu_custom_call.1
= control target key start
LH: loop header
LB: loop body
LE: loop exit
PB: predicated region body
PF: predicated region fallthrough
CT: control target
= control target key end

     0   :  { %14 = vsyncpa [#allocation3], 0  ;;  %s1681_s0 = inlined_call_operand.hbm [shape: f32[16,32], index: 0, kind: input, shape index: {}]   ;;  %s1682_s1 = inlined_call_operand.vmem [shape: f32[32,32], index: 1, kind: input, shape index: {}]   ;;  %s1683_s2 = inlined_call_operand.vmem [shape: f32[32,32], index: 2, kind: input, shape index: {}]   ;;  %s1684_s3 = inlined_call_operand.vmem [shape: f32[1,32], index: 3, kind: input, shape index: {}]   ;;  %s1685_s4 = inlined_call_operand.hbm [shape: f32[32,32], index: 4, kind: input, shape index: {}]   ;;  %s1686_s5 = inlined_call_operand.vmem [shape: f32[1,32], index: 5, kind: input, shape index: {}]   ;;  %s1687_s6 = inlined_call_operand.vmem [shape: f32[32,4], index: 6, kind: input, shape index: {}]   ;;  %s1688_s7 = inlined_call_operand.vmem [shape: f32[32,4], index: 7, kind: input, shape index: {}]   ;;  %s1689_s8 = inlined_call_operand.vmem [shape: f32[1,4], index: 8, kind: input, shape index: {}]   ;;  %s1690_s9 = inlined_call_operand.hbm [shape: f32[2,4], index: 9, kind: output, shape index: {}]  }
   0x1   :  { %15 = vsyncpa [#allocation6], 0 }
   0x2   :  { %16 = vsyncpa [#allocation4], 0  ;;  %s1444_s30 = smov [#allocation2]   ;;  %s1372_s13 = scalar_lea.hbm %s1681_s0, 256 }
   0x3   :  { %s22_s10 = sshll.u32 %s1444_s30, 4  ;;  %p1373_p0 = scmp.ne.s32.totalorder %s1681_s0, %s1372_s13  ;;  %s23_s10 = int_to_ptr.vmem [resolvable:$true] %s22_s10 }
   0x4   :  { %p1376_p1 = scmp.lt.u32.totalorder %s1372_s13, %s1681_s0 }
   0x6   :  { %p1378_p2 = pnand %p1376_p1, %p1373_p0 }
   0x8   :  { %1381 = shalt.err (!%p1378_p2)
}
   0x9   :  { %s1382_s18 = scalar_lea.vmem %s23_s10, 256  ;;  %p1387_p4 = scmp.lt.s32.totalorder %s23_s10, %s23_s10 }
   0xa   :  { %p1383_p3 = scmp.ne.s32.totalorder %s23_s10, %s1382_s18  ;;  %p1388_p5 = scmp.lt.s32.totalorder %s1382_s18, %s1382_s18 }
   0xc   :  { %p1389_p6 = por %p1388_p5, %p1387_p4 }
   0xe   :  { %p1390_p7 = pnand %p1389_p6, %p1383_p3 }
  0x10   :  { %1393 = shalt.err (!%p1390_p7)
}
  0x11   :  { %s1445_s19 = smov 128   ;;  %s1446_s20 = smov 8  }
  0x12   :  { %28 = dma.hbm_to_vmem [thread:$0]  %s1681_s0, 256, %s23_s10, [#allocation3], %s1445_s19, %s1445_s19, %s1446_s20  }
  0x13   :  { %s1447_s23 = smov [#allocation5]   ;;  %s1394_s27 = scalar_lea.hbm %s1685_s4, 512 }
  0x14   :  { %s40_s24 = sshll.u32 %s1447_s23, 4  ;;  %p1395_p8 = scmp.ne.s32.totalorder %s1685_s4, %s1394_s27  ;;  %s41_s24 = int_to_ptr.vmem [resolvable:$true] %s40_s24 }
  0x15   :  { %p1398_p9 = scmp.lt.u32.totalorder %s1394_s27, %s1685_s4 }
  0x17   :  { %p1400_p10 = pnand %p1398_p9, %p1395_p8 }
  0x19   :  { %1403 = shalt.err (!%p1400_p10)
}
  0x1a   :  { %s1404_s12 = scalar_lea.vmem %s41_s24, 512  ;;  %p1409_p12 = scmp.lt.s32.totalorder %s41_s24, %s41_s24 }
  0x1b   :  { %p1405_p11 = scmp.ne.s32.totalorder %s41_s24, %s1404_s12  ;;  %p1410_p13 = scmp.lt.s32.totalorder %s1404_s12, %s1404_s12 }
  0x1d   :  { %p1411_p0 = por %p1410_p13, %p1409_p12 }
  0x1f   :  { %p1412_p1 = pnand %p1411_p0, %p1405_p11 }
  0x21   :  { %1415 = shalt.err (!%p1412_p1)
}
  0x22   :  { %46 = dma.hbm_to_vmem [thread:$0]  %s1685_s4, 512, %s41_s24, [#allocation6], %s1445_s19, %s1445_s19, %s1446_s20  }
  0x23   :  { %1438 = dma.done.wait [#allocation3], 256  }
  0x24   :  { %1439 = vsyncadd [#allocation3], 4294967040 }
  0x25   :  { %1440 = dma.done.wait [#allocation6], 512  }
  0x26   :  { %1441 = vsyncadd [#allocation6], 4294966784  ;;  %v1448_v0 = vmov 0.0|0.0   ;;  %vm1449_vm0 = vmmov 0   ;;  %v1450_v1 = vmov 0.0   ;;  %vm74_vm1 = vcmask 261120  }
  0x27   :  { %1276 = vmatprep.subr.bf16.mxu1 %v1448_v0  ;;  %1155 = vmatprep.mubr.msk.f32.mxu1 %vm1449_vm0, %v1450_v1  ;;  %v63_v2 = vld [vmem:[%s1682_s1] sm:$0xff]  ;;  %v64_v3 = vld [vmem:[%s1682_s1 + $0x8] sm:$0xff]  ;;  %v65_v4 = vld [vmem:[%s1682_s1 + $0x10] sm:$0xff]  ;;  %vm1031_vm2 = vcmask 25600  }
  0x28   :  { %v1268_v5 = vpack.c.bf16 %v64_v3, %v63_v2  ;;  %v66_v6 = vld [vmem:[%s1682_s1 + $0x18] sm:$0xff]  ;;  %v61_v7 = vld [vmem:[#allocation2] sm:$0xff]  ;;  %v242_v10 = vld [vmem:[%s1683_s2 + $0x8] sm:$0xff] }
  0x29   :  { %v1272_v8 = vpack.c.bf16 %v66_v6, %v65_v4  ;;  %1144 = vmatprep.mubr.msk.f32.mxu0 %vm74_vm1, %v61_v7  ;;  %v241_v9 = vld [vmem:[%s1683_s2] sm:$0xff]  ;;  %v62_v11 = vld [vmem:[#allocation2 + $0x8] sm:$0xff]  ;;  %v243_v13 = vld [vmem:[%s1683_s2 + $0x10] sm:$0xff] }
  0x2a   :  { %1269 = vmatprep.subr.bf16.mxu0 %v1268_v5  ;;  %v1548_v12 = vpack.c.bf16 %v242_v10, %v241_v9  ;;  %v244_v14 = vld [vmem:[%s1683_s2 + $0x18] sm:$0xff]  ;;  %v156_v16 = vld [vmem:[#allocation5] sm:$0xff]  ;;  %v158_v19 = vld [vmem:[#allocation5 + $0x10] sm:$0xff]  ;;  %v167_v22 = vrot.slane %v62_v11, 6 }
  0x2b   :  { %1271 = vmatpush3.bf16.msra.mxu0 %v1268_v5  ;;  %v1559_v15 = vpack.c.bf16 %v244_v14, %v243_v13  ;;  %v157_v17 = vld [vmem:[#allocation5 + $0x8] sm:$0xff]  ;;  %v159_v20 = vld [vmem:[#allocation5 + $0x18] sm:$0xff]  ;;  %v1060_v23 = vld [vmem:[%s1684_s3] ss:$0 sm:$0xff] }
  0x2c   :  { %1273 = vmatprep.subr.bf16.mxu0 %v1272_v8  ;;  %v1277_v18 = vpack.c.bf16 %v157_v17, %v156_v16  ;;  %v1280_v21 = vpack.c.bf16 %v159_v20, %v158_v19  ;;  %v1063_v60 = vld [vmem:[%s1686_s5] ss:$0 sm:$0xff]  ;;  %v873_v63 = vld [vmem:[%s1688_s7 + $0x8] sm:$0xff]  ;;  %v874_v5 = vld [vmem:[%s1688_s7 + $0x10] sm:$0xff] }
  0x2d   :  { %v872_v62 = vld [vmem:[%s1688_s7] sm:$0xff]  ;;  %v875_v6 = vld [vmem:[%s1688_s7 + $0x18] sm:$0xff]  ;;  %v870_v20 = vld [vmem:[%s1687_s6 + $0x10] sm:$0xff] }
  0x2e   :  { %1278 = vmatpush3.bf16.msra.mxu1 %v1277_v18  ;;  %v1331_v3 = vpack.c.bf16 %v873_v63, %v872_v62  ;;  %v1334_v7 = vpack.c.bf16 %v875_v6, %v874_v5  ;;  %v868_v17 = vld [vmem:[%s1687_s6] sm:$0xff]  ;;  %v869_v18 = vld [vmem:[%s1687_s6 + $0x8] sm:$0xff] }
  0x2f   :  { %1275 = vmatpush3.bf16.msra.mxu0 %v1272_v8  ;;  %1279 = vmatprep.subr.bf16.mxu1 %v1448_v0  ;;  %v1337_v19 = vpack.c.bf16 %v869_v18, %v868_v17 }
  0x30   :  { %1282 = vmatprep.subr.bf16.mxu0 %v1448_v0 }
  0x32   :  { %1145 = vmatmul.mubr.msk.f32.vlgmr.msra.gmra.mrb[0].mxu0 %vm74_vm1, %v62_v11  ;;  %1281 = vmatpush3.bf16.msra.mxu1 %v1280_v21 }
  0x33   :  { %1284 = vmatpush3.bf16.msra.mxu0 %v1548_v12  ;;  %1166 = vmatprep.mubr.msk.f32.mxu0 %vm1449_vm0, %v1450_v1 }
  0x34   :  { %1285 = vmatprep.subr.bf16.mxu0 %v1448_v0  ;;  %1288 = vmatprep.subr.bf16.mxu1 %v1448_v0 }
  0x35   :  { %1156 = vmatmul.mubr.msk.f32.vlgmr.msra.gmra.mrb[0].mxu1 %vm74_vm1, %v167_v22 }
  0x36   :  { %1290 = vmatpush3.bf16.msra.mxu1 %v1548_v12  ;;  %1177 = vmatprep.mubr.msk.f32.mxu1 %vm1449_vm0, %v1450_v1 }
  0x37   :  { %1287 = vmatpush3.bf16.msra.mxu0 %v1559_v15  ;;  %1291 = vmatprep.subr.bf16.mxu1 %v1448_v0 }
  0x38   :  { %1294 = vmatprep.subr.bf16.mxu0 %v1448_v0 }
  0x3a   :  { %1167 = vmatmul.mubr.f32.vlgmr.msra.gmra.mrb[2].mxu0 %v1450_v1  ;;  %1293 = vmatpush3.bf16.msra.mxu1 %v1559_v15 }
  0x3b   :  { %1296 = vmatpush3.bf16.msra.mxu0 %v1548_v12  ;;  %1188 = vmatprep.mubr.msk.f32.mxu0 %vm1449_vm0, %v1450_v1 }
  0x3c   :  { %1297 = vmatprep.subr.bf16.mxu0 %v1448_v0  ;;  %1300 = vmatprep.subr.bf16.mxu1 %v1448_v0 }
  0x3f   :  { %1299 = vmatpush3.bf16.msra.mxu0 %v1559_v15 }
  0x40   :  { %1306 = vmatprep.subr.bf16.mxu0 %v1448_v0 }
 0x105   :  { %v1146_v24 = vpop.f32.mrb[0].mxu0 }
 0x106   :  { %v1585_v25 = vadd.f32 %v1146_v24, %v1060_v23  ;;  %v147_v26 = vpop.f32.mrb[1].mxu0 }
 0x107   :  { %v148_v27 = vadd.f32 %v1060_v23, %v147_v26 }
 0x108   :  { %v236_v32 = vpop.f32.mrb[0].mxu1 }
 0x109   :  { %v1157_v33 = vpop.f32.mrb[1].mxu1  ;;  %v237_v61 = vadd.f32 %v1063_v60, %v236_v32 }
 0x10d   :  { %v314_v28 = vpop.f32.mrb[2].mxu0 }
 0x10e   :  { %v318_v29 = vadd.f32 %v314_v28, %v148_v27  ;;  %v1168_v30 = vpop.f32.mrb[3].mxu0 }
 0x110   :  { %1350 = vtanh.f32 %v318_v29  ;;  %v1074_v29 = vld [vmem:[%s1689_s8] ss:$0 sm:$0xff] }
 0x11a   :  { %v1351_v31 = vpop.eup %1350 }
 0x11b   :  { %1178 = vmatmul.mubr.msk.f32.vlgmr.msra.gmra.mrb[2].mxu1 %vm74_vm1, %v1351_v31 }
 0x11c   :  { %1302 = vmatpush3.bf16.msra.mxu1 %v1548_v12  ;;  %1199 = vmatprep.mubr.msk.f32.mxu1 %vm1449_vm0, %v1450_v1 }
 0x11d   :  { %1303 = vmatprep.subr.bf16.mxu1 %v1448_v0 }
 0x120   :  { %1305 = vmatpush3.bf16.msra.mxu1 %v1559_v15 }
 0x121   :  { %1312 = vmatprep.subr.bf16.mxu1 %v1448_v0 }
 0x1ee   :  { %v389_v34 = vpop.f32.mrb[2].mxu1 }
 0x1ef   :  { %v394_v35 = vrot.slane %v389_v34, 6  ;;  %v1179_v36 = vpop.f32.mrb[3].mxu1 }
 0x1f1   :  { %v396_v37 = vadd.f32 %v394_v35, %v148_v27 }
 0x1f3   :  { %1352 = vtanh.f32 %v396_v37 }
 0x1fd   :  { %v1353_v38 = vpop.eup %1352 }
 0x1fe   :  { %v399_v39 = vrot.slane %v1353_v38, 2 }
 0x200   :  { %1189 = vmatmul.mubr.msk.f32.vlgmr.msra.gmra.mrb[4].mxu0 %vm74_vm1, %v399_v39 }
 0x201   :  { %1308 = vmatpush3.bf16.msra.mxu0 %v1548_v12  ;;  %1210 = vmatprep.mubr.msk.f32.mxu0 %vm1449_vm0, %v1450_v1 }
 0x202   :  { %1309 = vmatprep.subr.bf16.mxu0 %v1448_v0 }
 0x205   :  { %1311 = vmatpush3.bf16.msra.mxu0 %v1559_v15 }
 0x206   :  { %1318 = vmatprep.subr.bf16.mxu0 %v1448_v0 }
 0x2d3   :  { %v468_v40 = vpop.f32.mrb[4].mxu0 }
 0x2d4   :  { %v473_v41 = vrot.slane %v468_v40, 4  ;;  %v1190_v42 = vpop.f32.mrb[5].mxu0 }
 0x2d6   :  { %v475_v43 = vadd.f32 %v473_v41, %v148_v27 }
 0x2d8   :  { %1354 = vtanh.f32 %v475_v43 }
 0x2e2   :  { %v1355_v44 = vpop.eup %1354 }
 0x2e3   :  { %v478_v45 = vrot.slane %v1355_v44, 4 }
 0x2e5   :  { %1200 = vmatmul.mubr.msk.f32.vlgmr.msra.gmra.mrb[4].mxu1 %vm74_vm1, %v478_v45 }
 0x2e6   :  { %1314 = vmatpush3.bf16.msra.mxu1 %v1548_v12  ;;  %1221 = vmatprep.mubr.msk.f32.mxu1 %vm1449_vm0, %v1450_v1 }
 0x2e7   :  { %1315 = vmatprep.subr.bf16.mxu1 %v1448_v0 }
 0x2ea   :  { %1317 = vmatpush3.bf16.msra.mxu1 %v1559_v15 }
 0x2eb   :  { %1324 = vmatprep.subr.bf16.mxu1 %v1448_v0 }
 0x3b8   :  { %v547_v46 = vpop.f32.mrb[4].mxu1 }
 0x3b9   :  { %v552_v47 = vrot.slane %v547_v46, 2  ;;  %v1201_v48 = vpop.f32.mrb[5].mxu1 }
 0x3bb   :  { %v554_v49 = vadd.f32 %v552_v47, %v148_v27 }
 0x3bd   :  { %1356 = vtanh.f32 %v554_v49 }
 0x3c7   :  { %v1357_v50 = vpop.eup %1356 }
 0x3c8   :  { %v557_v51 = vrot.slane %v1357_v50, 6 }
 0x3ca   :  { %1211 = vmatmul.mubr.msk.f32.vlgmr.msra.gmra.mrb[6].mxu0 %vm74_vm1, %v557_v51 }
 0x3cb   :  { %1320 = vmatpush3.bf16.msra.mxu0 %v1548_v12  ;;  %1232 = vmatprep.mubr.msk.f32.mxu0 %vm1449_vm0, %v1450_v1 }
 0x3cc   :  { %1321 = vmatprep.subr.bf16.mxu0 %v1448_v0 }
 0x3cf   :  { %1323 = vmatpush3.bf16.msra.mxu0 %v1559_v15 }
 0x3d0   :  { %1330 = vmatprep.subr.bf16.mxu0 %v1448_v0 }
 0x49d   :  { %v626_v52 = vpop.f32.mrb[6].mxu0 }
 0x49e   :  { %v630_v53 = vadd.f32 %v626_v52, %v1585_v25  ;;  %v1212_v54 = vpop.f32.mrb[7].mxu0 }
 0x4a0   :  { %1358 = vtanh.f32 %v630_v53 }
 0x4aa   :  { %v1359_v55 = vpop.eup %1358 }
 0x4ab   :  { %1222 = vmatmul.mubr.msk.f32.vlgmr.msra.gmra.mrb[6].mxu1 %vm74_vm1, %v1359_v55 }
 0x4ac   :  { %1326 = vmatpush3.bf16.msra.mxu1 %v1548_v12  ;;  %1243 = vmatprep.mubr.msk.f32.mxu1 %vm1449_vm0, %v1450_v1 }
 0x4ad   :  { %1327 = vmatprep.subr.bf16.mxu1 %v1448_v0 }
 0x4b0   :  { %1329 = vmatpush3.bf16.msra.mxu1 %v1559_v15 }
 0x4b1   :  { %1336 = vmatprep.subr.bf16.mxu1 %v1448_v0 }
 0x57e   :  { %v701_v56 = vpop.f32.mrb[6].mxu1 }
 0x57f   :  { %v706_v57 = vrot.slane %v701_v56, 6  ;;  %v1223_v58 = vpop.f32.mrb[7].mxu1 }
 0x581   :  { %v708_v59 = vadd.f32 %v706_v57, %v1585_v25 }
 0x583   :  { %1360 = vtanh.f32 %v708_v59 }
 0x584   :  { %1362 = vtanh.f32 %v237_v61 }
 0x58d   :  { %v1361_v2 = vpop.eup %1360 }
 0x58e   :  { %v711_v4 = vrot.slane %v1361_v2, 2  ;;  %v1363_v8 = vpop.eup %1362 }
 0x590   :  { %1233 = vmatmul.mubr.msk.f32.vlgmr.msra.gmra.mrb[8].mxu0 %vm74_vm1, %v711_v4 }
 0x591   :  { %1332 = vmatpush3.bf16.msra.mxu0 %v1331_v3  ;;  %1254 = vmatprep.mubr.msk.f32.mxu0 %vm1449_vm0, %v1450_v1 }
 0x592   :  { %1333 = vmatprep.subr.bf16.mxu0 %v1448_v0 }
 0x595   :  { %1335 = vmatpush3.bf16.msra.mxu0 %v1334_v7 }
 0x598   :  { %1255 = vmatmul.mubr.msk.f32.vlgmr.msra.gmra.mrb[10].mxu0 %vm74_vm1, %v1363_v8 }
 0x663   :  { %v780_v9 = vpop.f32.mrb[8].mxu0 }
 0x664   :  { %v785_v10 = vrot.slane %v780_v9, 4  ;;  %v1234_v11 = vpop.f32.mrb[9].mxu0 }
 0x666   :  { %v787_v12 = vadd.f32 %v785_v10, %v1585_v25 }
 0x668   :  { %1364 = vtanh.f32 %v787_v12 }
 0x66b   :  { %v945_v13 = vpop.f32.mrb[10].mxu0 }
 0x66c   :  { %v1256_v14 = vpop.f32.mrb[11].mxu0 }
 0x672   :  { %v1365_v15 = vpop.eup %1364 }
 0x673   :  { %v790_v16 = vrot.slane %v1365_v15, 4 }
 0x675   :  { %1244 = vmatmul.mubr.msk.f32.vlgmr.msra.gmra.mrb[8].mxu1 %vm74_vm1, %v790_v16 }
 0x676   :  { %1265 = vmatprep.mubr.msk.f32.mxu1 %vm1449_vm0, %v1450_v1  ;;  %1338 = vmatpush3.bf16.msra.mxu1 %v1337_v19  ;;  %v871_v1 = vld [vmem:[%s1687_s6 + $0x18] sm:$0xff]  ;;  %s1451_s6 = smov [#allocation7]  }
 0x677   :  { %1339 = vmatprep.subr.bf16.mxu1 %v1448_v0  ;;  %v1340_v21 = vpack.c.bf16 %v871_v1, %v870_v20  ;;  %s1050_s22 = sshll.u32 %s1451_s6, 4  ;;  %s1051_s22 = int_to_ptr.vmem [resolvable:$true] %s1050_s22 }
 0x678   :  { %s1416_s8 = scalar_lea.vmem %s1051_s22, 32  ;;  %p1421_p3 = scmp.lt.s32.totalorder %s1051_s22, %s1051_s22 }
 0x679   :  { %p1417_p2 = scmp.ne.s32.totalorder %s1051_s22, %s1416_s8  ;;  %p1422_p4 = scmp.lt.s32.totalorder %s1416_s8, %s1416_s8 }
 0x67a   :  { %1341 = vmatpush3.bf16.msra.mxu1 %v1340_v21 }
 0x67b   :  { %p1423_p5 = por %p1422_p4, %p1421_p3 }
 0x67d   :  { %p1424_p6 = pnand %p1423_p5, %p1417_p2 }
 0x748   :  { %v859_v22 = vpop.f32.mrb[8].mxu1 }
 0x749   :  { %v864_v23 = vrot.slane %v859_v22, 2  ;;  %v1245_v24 = vpop.f32.mrb[9].mxu1 }
 0x74b   :  { %v866_v26 = vadd.f32 %v864_v23, %v1585_v25 }
 0x74d   :  { %1366 = vtanh.f32 %v866_v26 }
 0x757   :  { %v1367_v27 = vpop.eup %1366 }
 0x758   :  { %v950_v28 = vrot.slane %v1367_v27, 6 }
 0x75a   :  { %1266 = vmatmul.mubr.msk.f32.vlgmr.msra.gmra.mrb[10].mxu1 %vm74_vm1, %v950_v28 }
 0x82d   :  { %v1019_v0 = vpop.f32.mrb[10].mxu1 }
 0x82e   :  { %v1020_v30 = vadd.f32 %v1019_v0, %v945_v13  ;;  %v1267_v31 = vpop.f32.mrb[11].mxu1 }
 0x830   :  { %v1030_v32 = vadd.f32 %v1074_v29, %v1020_v30 }
 0x832   :  { %v1032_v33 = vsel %vm1031_vm2, %v1030_v32, -inf }
 0x833   :  { %1033 = vmax.xlane.f32.xlu0 %v1032_v33 }
 0x8c0   :  { %v1034_v34 = vpop.xlane.xlu0 %1033 }
 0x8c1   :  { %v1035_v35 = vsub.f32 %v1030_v32, %v1034_v34 }
 0x8c3   :  { %v1036_v25 = vmul.f32 1.442695, %v1035_v35 }
 0x8c5   :  { %1368 = vpow2.f32 %v1036_v25 }
 0x8cf   :  { %v1369_v36 = vpop.eup %1368 }
 0x8d0   :  { %v1038_v37 = vsel %vm1031_vm2, %v1369_v36, 0.0 }
 0x8d1   :  { %1039 = vadd.xlane.f32.xlu0 %v1038_v37 }
 0x95e   :  { %v1040_v38 = vpop.xlane.xlu0 %1039 }
 0x95f   :  { %1370 = vrcp.f32 %v1040_v38 }
 0x969   :  { %v1371_v39 = vpop.eup %1370 }
 0x96a   :  { %v1042_v40 = vmul.f32 %v1371_v39, %v1369_v36 }
 0x96c   :  { %1043 = vst.msk [vmem:[#allocation7] sm:$0x3] %vm1031_vm2, %v1042_v40 }
 0x96d   :  { %1427 = shalt.err (!%p1424_p6)
}
 0x96e   :  { %s1428_s24 = scalar_lea.hbm %s1690_s9, 32 }
 0x96f   :  { %p1429_p7 = scmp.ne.s32.totalorder %s1690_s9, %s1428_s24  ;;  %p1432_p8 = scmp.lt.u32.totalorder %s1428_s24, %s1690_s9 }
 0x971   :  { %p1434_p9 = pnand %p1432_p8, %p1429_p7 }
 0x973   :  { %1437 = shalt.err (!%p1434_p9)
}
 0x974   :  { %1053 = dma.vmem_to_hbm [thread:$0]  %s1051_s22, 32, %s1690_s9, [#allocation4]  }
 0x975   :  { %1442 = dma.done.wait [#allocation4], 32  }
 0x976   :  { %1443 = vsyncadd [#allocation4], 4294967264 }
 0x977   :  { %1057 = vsyncpa [#allocation3], 1 }
 0x978   :  { %1058 = vsyncpa [#allocation6], 1 }
 0x979   :  { %1059 = vsyncpa [#allocation4], 1 }

</bundles_post_ra>
